<compile_context>
chip_gen: v5e
topology: v5e:2x2
jax: 0.10.0
libtpu: 0.0.40
codegen_flags: <defaults>
</compile_context>

<pallas_src>
import functools

import jax
import jax.numpy as jnp
from jax.experimental import pallas as pl
from jax.experimental.pallas import tpu as pltpu

AURAL_DIM, VISUAL_DIM, TEXT_DIM, USER_DIM = 128, 128, 16, 7
MISC_DIM = TEXT_DIM + USER_DIM                    # 23  (text ++ user, fused host-side)
IN_DIM = AURAL_DIM + VISUAL_DIM + MISC_DIM        # 279
H0, H1, OUT = 64, 16, 3

_S_VIS = AURAL_DIM                                # 128 : start of visual rows
_S_MISC = AURAL_DIM + VISUAL_DIM                  # 256 : start of text|user rows


def fused_affine_kernel(a_ref, v_ref, m_ref, w_ref, b_ref, o_ref):
    # y = [aural | visual | text | user] @ W_eff + b_eff.  The concat is
    # expressed as three partial dots (K = 128 / 128 / 23) against static
    # row-slices of the single (279, 3) fused weight; slice starts (0, 128,
    # 256) are sublane-aligned so the sliced loads are cheap.
    acc = jnp.dot(a_ref[...], w_ref[0:_S_VIS, :],
                  preferred_element_type=jnp.float32)
    acc += jnp.dot(v_ref[...], w_ref[_S_VIS:_S_MISC, :],
                   preferred_element_type=jnp.float32)
    acc += jnp.dot(m_ref[...], w_ref[_S_MISC:IN_DIM, :],
                   preferred_element_type=jnp.float32)
    o_ref[...] = (acc + b_ref[...]).astype(o_ref.dtype)


def prepare_fused_params(params):
    """One-time (outside the forward path): collapse the three linear layers
    into a single (279, 3) weight + (1, 3) bias.  Row order of the weight
    matches the forward()'s cat order [aural, visual, text, user].
    NOTE: must be re-run whenever the underlying three layers' weights change
    (inference-only fusion; dropout is never applied in forward())."""
    w0, b0, w1, b1, w2, b2 = params               # PyTorch layout: weight (out, in)
    w_eff = w0.T @ w1.T @ w2.T                    # (279, 3)
    b_eff = b0 @ w1.T @ w2.T + b1 @ w2.T + b2     # (3,)
    return w_eff, b_eff[None, :]                  # bias stored as (1, 3)


def _round_up(x, m):
    return ((x + m - 1) // m) * m


@functools.partial(jax.jit, static_argnames=("block_b",))
def simple_model_forward(user, aural, visual, text, fused_params, *,
                         block_b=4096):
    w_eff, b_eff = fused_params
    B = user.shape[0]

    # Merge the two narrow operands into one (B, 23) array: one input, one dot.
    misc = jnp.concatenate([text, user], axis=1)

    # Batch tile: multiple of 8, capped at block_b, and chosen so there are
    # >= 4 grid steps when B allows it (>= 2 steps are required for v7x's two
    # TensorCores to both run under dimension_semantics=("parallel",); >= 4
    # amortizes pipeline warm-up and balances load).
    if B <= 8:
        tb = B                                    # single block == full array dim
    else:
        tb = min(block_b, _round_up(pl.cdiv(B, 4), 8))
    grid = (pl.cdiv(B, tb),)
    # When B % tb != 0 the last input block contains padding rows; rows are
    # independent and Pallas masks the OOB output writeback, so results for
    # valid rows are unaffected.

    # Explicit VMEM budget: 3 input tiles + 1 output tile, each lane-padded to
    # 128 lanes of f32, double-buffered, plus resident weight/bias and slack.
    vmem_bytes = 2 * 4 * tb * 128 * 4 + (4 << 20)
    vmem_bytes = min(max(vmem_bytes, 16 << 20), 48 << 20)

    row = lambda i: (i, 0)     # batch-tiled operands
    const = lambda i: (0, 0)   # weight/bias: same block every step -> VMEM-resident

    grid_spec = pl.GridSpec(
        grid=grid,
        in_specs=[
            pl.BlockSpec((tb, AURAL_DIM), row),
            pl.BlockSpec((tb, VISUAL_DIM), row),
            pl.BlockSpec((tb, MISC_DIM), row),
            pl.BlockSpec((IN_DIM, OUT), const),
            pl.BlockSpec((1, OUT), const),
        ],
        out_specs=pl.BlockSpec((tb, OUT), row),
    )

    return pl.pallas_call(
        fused_affine_kernel,
        out_shape=jax.ShapeDtypeStruct((B, OUT), jnp.float32),
        grid_spec=grid_spec,
        compiler_params=pltpu.CompilerParams(
            # Independent batch tiles: sharded across v7x's 2 TensorCores,
            # harmless no-op on single-TC v5e/v6e.
            dimension_semantics=("parallel",),
            vmem_limit_bytes=vmem_bytes),
    )(aural, visual, misc, w_eff, b_eff)


def init_params(key):
    # Deterministic synthetic init (PyTorch nn.Linear shapes: weight (out, in)).
    ks = jax.random.split(key, 3)
    w0 = jax.random.normal(ks[0], (H0, IN_DIM), jnp.float32) * 0.02
    b0 = jnp.zeros((H0,), jnp.float32)
    w1 = jax.random.normal(ks[1], (H1, H0), jnp.float32) * 0.02
    b1 = jnp.zeros((H1,), jnp.float32)
    w2 = jax.random.normal(ks[2], (OUT, H1), jnp.float32) * 0.02
    b2 = jnp.zeros((OUT,), jnp.float32)
    return (w0, b0, w1, b1, w2, b2)


if __name__ == "__main__":
    key = jax.random.PRNGKey(0)
    k_u, k_a, k_v, k_t, k_p = jax.random.split(key, 5)
    B = 16
    user = jax.random.normal(k_u, (B, USER_DIM), jnp.float32)
    aural = jax.random.normal(k_a, (B, AURAL_DIM), jnp.float32)
    visual = jax.random.normal(k_v, (B, VISUAL_DIM), jnp.float32)
    text = jax.random.normal(k_t, (B, TEXT_DIM), jnp.float32)

    params = init_params(k_p)
    fused_params = jax.tree.map(jax.block_until_ready,
                                prepare_fused_params(params))  # one-time prep

    # B=16 -> tb=8, grid=(2,): exercises the batch-tiled, multi-step path.
    out = simple_model_forward(user, aural, visual, text, fused_params)
    jax.block_until_ready(out)

    # Pure-JAX reference: the original 3-layer forward (dropout is a no-op in
    # the module's forward, so it is omitted).
    x = jnp.concatenate([aural, visual, text, user], axis=1)
    w0, b0, w1, b1, w2, b2 = params
    ref = ((x @ w0.T + b0) @ w1.T + b1) @ w2.T + b2
    assert out.shape == (B, OUT)
    assert jnp.allclose(out, ref, atol=1e-5, rtol=1e-5), (
        float(jnp.max(jnp.abs(out - ref))))
    print("KERNEL_OK")
</pallas_src>

<mosaic_0001>
module attributes {stable_mosaic.version = 11 : i64} {
  func.func @fused_affine_kernel(%arg0: i32, %arg1: memref<8x128xf32, #tpu.memory_space<vmem>>, %arg2: memref<8x128xf32, #tpu.memory_space<vmem>>, %arg3: memref<8x23xf32, #tpu.memory_space<vmem>>, %arg4: memref<279x3xf32, #tpu.memory_space<vmem>>, %arg5: memref<1x3xf32, #tpu.memory_space<vmem>>, %arg6: memref<8x3xf32, #tpu.memory_space<vmem>>) attributes {dimension_semantics = [#tpu.dimension_semantics<parallel>], iteration_bounds = array<i64: 2>, scalar_prefetch = 0 : i64, scratch_operands = 0 : i64, tpu.core_type = #tpu.core_type<tc>, window_params = [{transform_indices = @transform_0, window_bounds = array<i64: 8, 128>}, {transform_indices = @transform_1, window_bounds = array<i64: 8, 128>}, {transform_indices = @transform_2, window_bounds = array<i64: 8, 23>}, {pipeline_mode = #tpu.pipeline_mode<synchronous>, transform_indices = @transform_3, window_bounds = array<i64: 279, 3>}, {pipeline_mode = #tpu.pipeline_mode<synchronous>, transform_indices = @transform_4, window_bounds = array<i64: 1, 3>}, {transform_indices = @transform_5, window_bounds = array<i64: 8, 3>}]} {
    %c0 = arith.constant 0 : index
    %c0_0 = arith.constant 0 : index
    %0 = vector.load %arg1[%c0, %c0_0] : memref<8x128xf32, #tpu.memory_space<vmem>>, vector<8x128xf32>
    %c0_1 = arith.constant 0 : index
    %c0_2 = arith.constant 0 : index
    %1 = vector.load %arg4[%c0_1, %c0_2] : memref<279x3xf32, #tpu.memory_space<vmem>>, vector<128x3xf32>
    %cst = arith.constant dense<0.000000e+00> : vector<8x3xf32>
    %2 = tpu.matmul %0, %1, %cst {dimension_numbers = #tpu.dot_dimension_numbers<[1], [0], [0], [1], [0, 0, 1, 1], [], []>} : vector<8x128xf32>, vector<128x3xf32>, vector<8x3xf32> -> vector<8x3xf32>
    %c0_3 = arith.constant 0 : index
    %c0_4 = arith.constant 0 : index
    %3 = vector.load %arg2[%c0_3, %c0_4] : memref<8x128xf32, #tpu.memory_space<vmem>>, vector<8x128xf32>
    %c128 = arith.constant 128 : index
    %c0_5 = arith.constant 0 : index
    %4 = vector.load %arg4[%c128, %c0_5] : memref<279x3xf32, #tpu.memory_space<vmem>>, vector<128x3xf32>
    %cst_6 = arith.constant dense<0.000000e+00> : vector<8x3xf32>
    %5 = tpu.matmul %3, %4, %cst_6 {dimension_numbers = #tpu.dot_dimension_numbers<[1], [0], [0], [1], [0, 0, 1, 1], [], []>} : vector<8x128xf32>, vector<128x3xf32>, vector<8x3xf32> -> vector<8x3xf32>
    %6 = arith.addf %2, %5 : vector<8x3xf32>
    %c0_7 = arith.constant 0 : index
    %c0_8 = arith.constant 0 : index
    %7 = vector.load %arg3[%c0_7, %c0_8] : memref<8x23xf32, #tpu.memory_space<vmem>>, vector<8x23xf32>
    %c256 = arith.constant 256 : index
    %c0_9 = arith.constant 0 : index
    %8 = vector.load %arg4[%c256, %c0_9] : memref<279x3xf32, #tpu.memory_space<vmem>>, vector<23x3xf32>
    %cst_10 = arith.constant dense<0.000000e+00> : vector<8x3xf32>
    %9 = tpu.matmul %7, %8, %cst_10 {dimension_numbers = #tpu.dot_dimension_numbers<[1], [0], [0], [1], [0, 0, 1, 1], [], []>} : vector<8x23xf32>, vector<23x3xf32>, vector<8x3xf32> -> vector<8x3xf32>
    %10 = arith.addf %6, %9 : vector<8x3xf32>
    %c0_11 = arith.constant 0 : index
    %c0_12 = arith.constant 0 : index
    %11 = vector.load %arg5[%c0_11, %c0_12] : memref<1x3xf32, #tpu.memory_space<vmem>>, vector<1x3xf32>
    %12 = vector.broadcast %11 : vector<1x3xf32> to vector<8x3xf32>
    %13 = arith.addf %10, %12 : vector<8x3xf32>
    %c0_13 = arith.constant 0 : index
    %c0_14 = arith.constant 0 : index
    %14 = vector.load %arg6[%c0_13, %c0_14] : memref<8x3xf32, #tpu.memory_space<vmem>>, vector<8x3xf32>
    tpu.vector_store %arg6[%c0_13, %c0_14], %13 {strides = array<i32>} : memref<8x3xf32, #tpu.memory_space<vmem>>, vector<8x3xf32>,
    return
  }
  func.func @transform_0(%arg0: i32) -> (i32, i32) {
    %c0_i32 = arith.constant 0 : i32
    %c0_i32_0 = arith.constant 0 : i32
    return %arg0, %c0_i32 : i32, i32
  }
  func.func @transform_1(%arg0: i32) -> (i32, i32) {
    %c0_i32 = arith.constant 0 : i32
    %c0_i32_0 = arith.constant 0 : i32
    return %arg0, %c0_i32 : i32, i32
  }
  func.func @transform_2(%arg0: i32) -> (i32, i32) {
    %c0_i32 = arith.constant 0 : i32
    %c0_i32_0 = arith.constant 0 : i32
    return %arg0, %c0_i32 : i32, i32
  }
  func.func @transform_3(%arg0: i32) -> (i32, i32) {
    %c0_i32 = arith.constant 0 : i32
    %c0_i32_0 = arith.constant 0 : i32
    %c0_i32_1 = arith.constant 0 : i32
    return %c0_i32, %c0_i32_0 : i32, i32
  }
  func.func @transform_4(%arg0: i32) -> (i32, i32) {
    %c0_i32 = arith.constant 0 : i32
    %c0_i32_0 = arith.constant 0 : i32
    %c0_i32_1 = arith.constant 0 : i32
    return %c0_i32, %c0_i32_0 : i32, i32
  }
  func.func @transform_5(%arg0: i32) -> (i32, i32) {
    %c0_i32 = arith.constant 0 : i32
    %c0_i32_0 = arith.constant 0 : i32
    return %arg0, %c0_i32 : i32, i32
  }
}

</mosaic_0001>

<bundles_post_ra>
// kernel: simple_model_forward.1
= control target key start
LH: loop header
LB: loop body
LE: loop exit
PB: predicated region body
PF: predicated region fallthrough
CT: control target
= control target key end

     0   :  { %s505_s18 = smov 0   ;;  %s642_s0 = inlined_call_operand.vmem [shape: f32[16,128], index: 0, kind: input, shape index: {}]   ;;  %s643_s1 = inlined_call_operand.vmem [shape: f32[16,128], index: 1, kind: input, shape index: {}]   ;;  %s644_s2 = inlined_call_operand.vmem [shape: f32[16,23], index: 2, kind: input, shape index: {}]   ;;  %s645_s3 = inlined_call_operand.vmem [shape: f32[279,3], index: 3, kind: input, shape index: {}]   ;;  %s646_s4 = inlined_call_operand.vmem [shape: f32[1,3], index: 4, kind: input, shape index: {}]   ;;  %s647_s5 = inlined_call_operand.vmem [shape: f32[16,3], index: 5, kind: output, shape index: {}]  }
   0x1 LB: > { %s445_s19 = sadd.s32 4294967295, %s473_s18   ;;  %p449_p0 = scmp.ge.s32.totalorder %s473_s18, 1  ;;  %s473_s18 = sphi %s505_s18, %s15_s18  }
   0x2   : > { %p204_p1 = scmp.lt.s32.totalorder %s473_s18, 3 }
   0x4   : > { %p205_p2 = pnand %p449_p0, %p204_p1 }
   0x5   : > { %p238_p3 = scmp.lt.s32.totalorder (!%p205_p2), %s445_s19, 1 }
   0x6   : > { %208 = sbr.rel (%p205_p2) target bundleno = 177 (0xb1), region = 40 }
   0xb   : > { %v287_v0 = vld [vmem:[%s645_s3 + $0xf8] sm:$0xff]  ;;  %v286_v2 = vld [vmem:[%s645_s3 + $0xf0] sm:$0xff]  ;;  %v285_v4 = vld [vmem:[%s645_s3 + $0xe8] sm:$0xff]  ;;  %s649_s19 = smov (!%p238_p3, %s445_s19), 1  ;;  %vm336_vm0 = vcmask 1046528   ;;  %vm332_vm1 = vcmask 187392  }
   0xc   : > { %v270_v1 = vld [vmem:[%s645_s3 + $0x78] sm:$0xff]  ;;  %288 = vmatpush.msra.mxu0 %v287_v0  ;;  %v269_v3 = vld [vmem:[%s645_s3 + $0x70] sm:$0xff]  ;;  %v268_v5 = vld [vmem:[%s645_s3 + $0x68] sm:$0xff]  ;;  %s543_s15 = sshll.u32 %s649_s19, 3  ;;  %vm366_vm2 = vcmask 23552  }
   0xd   : > { %308 = vmatpush.msra.mxu1 %v270_v1  ;;  %v284_v6 = vld [vmem:[%s645_s3 + $0xe0] sm:$0xff]  ;;  %v283_v8 = vld [vmem:[%s645_s3 + $0xd8] sm:$0xff]  ;;  %v282_v10 = vld [vmem:[%s645_s3 + $0xd0] sm:$0xff]  ;;  %s249_s6 = scalar_lea.vmem %s644_s2, %s543_s15  ;;  %s245_s23 = scalar_lea.vmem %s643_s1, %s543_s15 }
   0xe   : > { %289 = vmatpush.msra.mxu0 %v286_v2  ;;  %v267_v7 = vld [vmem:[%s645_s3 + $0x60] sm:$0xff]  ;;  %v266_v9 = vld [vmem:[%s645_s3 + $0x58] sm:$0xff]  ;;  %v265_v11 = vld [vmem:[%s645_s3 + $0x50] sm:$0xff]  ;;  %s241_s19 = scalar_lea.vmem %s642_s0, %s543_s15  ;;  %s253_s9 = scalar_lea.vmem %s647_s5, %s543_s15 }
   0xf   : > { %309 = vmatpush.msra.mxu1 %v269_v3  ;;  %v331_v12 = vld [vmem:[%s645_s3 + $0x110] sm:$0x7f]  ;;  %v330_v13 = vld [vmem:[%s645_s3 + $0x108] sm:$0xff]  ;;  %v329_v16 = vld [vmem:[%s645_s3 + $0x100] sm:$0xff] }
  0x10   : > { %290 = vmatpush.msra.mxu0 %v285_v4  ;;  %v281_v14 = vld [vmem:[%s645_s3 + $0xc8] sm:$0xff]  ;;  %454 = vmatpush.msk.msra.mxu2 %vm336_vm0, %v331_v12  ;;  %v280_v17 = vld [vmem:[%s645_s3 + $0xc0] sm:$0xff]  ;;  %v279_v20 = vld [vmem:[%s645_s3 + $0xb8] sm:$0xff] }
  0x11   : > { %310 = vmatpush.msra.mxu1 %v268_v5  ;;  %v264_v15 = vld [vmem:[%s645_s3 + $0x48] sm:$0xff]  ;;  %v263_v18 = vld [vmem:[%s645_s3 + $0x40] sm:$0xff]  ;;  %v262_v21 = vld [vmem:[%s645_s3 + $0x38] sm:$0xff] }
  0x12   : > { %291 = vmatpush.msra.mxu0 %v284_v6  ;;  %354 = vmatpush.msra.mxu2 %v330_v13  ;;  %v328_v19 = vld [vmem:[%s249_s6] sm:$0xff]  ;;  %v278_v22 = vld [vmem:[%s645_s3 + $0xb0] sm:$0xff]  ;;  %v277_v24 = vld [vmem:[%s645_s3 + $0xa8] sm:$0xff] }
  0x13   : > { %311 = vmatpush.msra.mxu1 %v267_v7  ;;  %v261_v23 = vld [vmem:[%s645_s3 + $0x30] sm:$0xff]  ;;  %v260_v25 = vld [vmem:[%s645_s3 + $0x28] sm:$0xff]  ;;  %v276_v26 = vld [vmem:[%s645_s3 + $0xa0] sm:$0xff] }
  0x14   : > { %292 = vmatpush.msra.mxu0 %v283_v8  ;;  %355 = vmatpush.msra.mxu2 %v329_v16  ;;  %v259_v27 = vld [vmem:[%s645_s3 + $0x20] sm:$0xff]  ;;  %v275_v28 = vld [vmem:[%s645_s3 + $0x98] sm:$0xff]  ;;  %v274_v30 = vld [vmem:[%s645_s3 + $0x90] sm:$0xff] }
  0x15   : > { %312 = vmatpush.msra.mxu1 %v266_v9  ;;  %455 = vmatmul.msk.f32.vlgmr.msra.gmra.mxu2 %vm332_vm1, %v328_v19  ;;  %v258_v29 = vld [vmem:[%s645_s3 + $0x18] sm:$0xff]  ;;  %v257_v31 = vld [vmem:[%s645_s3 + $0x10] sm:$0xff]  ;;  %v273_v32 = vld [vmem:[%s645_s3 + $0x88] sm:$0xff] }
  0x16   : > { %293 = vmatpush.msra.mxu0 %v282_v10  ;;  %v256_v33 = vld [vmem:[%s645_s3 + $0x8] sm:$0xff]  ;;  %v272_v34 = vld [vmem:[%s645_s3 + $0x80] sm:$0xff] }
  0x17   : > { %313 = vmatpush.msra.mxu1 %v265_v11  ;;  %v255_v35 = vld [vmem:[%s645_s3] sm:$0xff] }
  0x18   : > { %294 = vmatpush.msra.mxu0 %v281_v14  ;;  %v271_v36 = vld [vmem:[%s245_s23] sm:$0xff] }
  0x19   : > { %314 = vmatpush.msra.mxu1 %v264_v15  ;;  %v254_v37 = vld [vmem:[%s241_s19] sm:$0xff] }
  0x1a   : > { %295 = vmatpush.msra.mxu0 %v280_v17  ;;  %v466_v42 = vld [vmem:[%s646_s4] ss:$0 sm:$0xff] }
  0x1b   : > { %315 = vmatpush.msra.mxu1 %v263_v18 }
  0x1c   : > { %296 = vmatpush.msra.mxu0 %v279_v20 }
  0x1d   : > { %316 = vmatpush.msra.mxu1 %v262_v21 }
  0x1e   : > { %297 = vmatpush.msra.mxu0 %v278_v22 }
  0x1f   : > { %317 = vmatpush.msra.mxu1 %v261_v23 }
  0x20   : > { %298 = vmatpush.msra.mxu0 %v277_v24 }
  0x21   : > { %318 = vmatpush.msra.mxu1 %v260_v25 }
  0x22   : > { %299 = vmatpush.msra.mxu0 %v276_v26 }
  0x23   : > { %319 = vmatpush.msra.mxu1 %v259_v27 }
  0x24   : > { %300 = vmatpush.msra.mxu0 %v275_v28 }
  0x25   : > { %320 = vmatpush.msra.mxu1 %v258_v29 }
  0x26   : > { %301 = vmatpush.msra.mxu0 %v274_v30 }
  0x27   : > { %321 = vmatpush.msra.mxu1 %v257_v31 }
  0x28   : > { %302 = vmatpush.msra.mxu0 %v273_v32 }
  0x29   : > { %322 = vmatpush.msra.mxu1 %v256_v33 }
  0x2a   : > { %303 = vmatpush.msra.mxu0 %v272_v34 }
  0x2b   : > { %323 = vmatpush.msra.mxu1 %v255_v35  ;;  %304 = vmatmul.f32.vlgmr.msra.gmra.mxu0 %v271_v36 }
  0x2c   : > { %324 = vmatmul.f32.vlgmr.msra.gmra.mxu1 %v254_v37 }
  0x98   : > { %v357_v38 = vpop.f32.mrf.mxu2 }
  0xa8   : > { %v305_v39 = vpop.f32.mrf.mxu0 }
  0xa9   : > { %v325_v40 = vpop.f32.mrf.mxu1 }
  0xaa   : > { %v326_v41 = vadd.f32 %v325_v40, %v305_v39 }
  0xac   : > { %v360_v43 = vadd.f32 %v357_v38, %v326_v41 }
  0xae   : > { %v365_v44 = vadd.f32 %v466_v42, %v360_v43 }
  0xb0   : > { %367 = vst.msk [vmem:[%s253_s9] sm:$0xff] %vm366_vm2, %v365_v44 }
  0xb1 PF: > { %s15_s18 = sadd.s32 1, %s473_s18  }
  0xb2   : > { %p12_p4 = scmp.ge.s32.totalorder %s15_s18, 4  }
  0xb4   :  { %14 = sbr.rel (!%p12_p4) target bundleno = 1 (0x1), region = 76 }

</bundles_post_ra>
